<compile_context>
chip_gen: v6e
topology: v6e:2x2x1
jax: 0.10.0
libtpu: 0.0.40
codegen_flags: <defaults>
</compile_context>

<pallas_src>
import numpy as np

import jax
import jax.numpy as jnp
from jax.experimental import pallas as pl
from jax.experimental.pallas import tpu as pltpu


def _round_up(x: int, m: int) -> int:
    return (x + m - 1) // m * m


def _pick_tile_b(B: int) -> int:
    """Batch tile: multiple of 8, <= 512.

    Minimizes padded batch rows subject to keeping enough grid steps for the
    BlockSpec double-buffer to hide x/out DMAs (and >= 4 steps per TensorCore
    on v7x when the batch is large enough); prefers an even step count so the
    'parallel' axis splits evenly across 2 TCs, then the larger tile.
    """
    B8 = _round_up(B, 8)
    if B8 <= 128:
        return B8
    target_steps = max(1, min(8, B // 128))
    candidates = {128, 256, 512}
    if B8 <= 512:
        candidates.add(B8)
    best_key, best_t = None, None
    for t in sorted(candidates):
        steps = -(-B // t)
        pad = steps * t - B
        key = (steps < target_steps, pad, steps % 2, -t)
        if best_key is None or key < best_key:
            best_key, best_t = key, t
    return best_t


def _ffn_kernel_resident(x_ref, w1_ref, b1_ref, w2_ref, b2_ref, out_ref, h_ref):
    """Whole hidden dim resident: one batch tile per grid step."""
    # fc1: cast the f32 x tile to bf16 on the VPU (the kernel is MXU/DMA bound,
    # the VALU has slack), f32 accumulation on the MXU.
    h = jnp.dot(x_ref[...].astype(jnp.bfloat16), w1_ref[...],
                preferred_element_type=jnp.float32)
    # Bias + ReLU in f32; store the activation as bf16 (half the scratch and
    # half the vector-store traffic vs an f32 round-trip).
    h_ref[...] = jnp.maximum(h + b1_ref[...], 0.0).astype(jnp.bfloat16)
    # fc2: bf16 x bf16 -> f32 accumulate.
    y = jnp.dot(h_ref[...], w2_ref[...], preferred_element_type=jnp.float32)
    out_ref[...] = (y + b2_ref[...]).astype(out_ref.dtype)


def _ffn_kernel_hidden_tiled(x_ref, w1_ref, b1_ref, w2_ref, b2_ref, out_ref,
                             h_ref, acc_ref):
    """Hidden dim tiled: grid = (batch tiles, hidden chunks); fc2 accumulates."""
    k = pl.program_id(1)

    @pl.when(k == 0)
    def _():
        acc_ref[...] = jnp.zeros_like(acc_ref)

    h = jnp.dot(x_ref[...].astype(jnp.bfloat16), w1_ref[...],
                preferred_element_type=jnp.float32)
    h_ref[...] = jnp.maximum(h + b1_ref[...], 0.0).astype(jnp.bfloat16)
    acc_ref[...] += jnp.dot(h_ref[...], w2_ref[...],
                            preferred_element_type=jnp.float32)

    @pl.when(k == pl.num_programs(1) - 1)
    def _():
        out_ref[...] = (acc_ref[...] + b2_ref[...]).astype(out_ref.dtype)


class FFNClassifierPallas:
    """Pallas TPU port of FFNClassifier: fc2(relu(fc1(x))) fused in one kernel.

    Weights are expected in [in, out] layout (i.e. PyTorch `weight.T`). They
    are zero-padded to lane-dense (multiple-of-128) feature dims and cast to
    bf16 exactly once at construction. Per batch size, the padded-rows +
    pallas_call + slice path is built and jitted once, then cached.
    """

    def __init__(self, w1, b1, w2, b2, *, out_dtype=jnp.float32, hidden_tile=None):
        w1 = jnp.asarray(w1, jnp.float32)
        b1 = jnp.asarray(b1, jnp.float32)
        w2 = jnp.asarray(w2, jnp.float32)
        b2 = jnp.asarray(b2, jnp.float32)
        in_size, hidden = w1.shape
        hidden2, out_size = w2.shape
        assert hidden2 == hidden and b1.shape == (hidden,) and b2.shape == (out_size,)

        self.in_size, self.hidden, self.out_size = in_size, hidden, out_size
        self.out_dtype = out_dtype

        try:
            self.vmem_cap = int(pltpu.get_tpu_info().vmem_capacity_bytes)
        except Exception:  # pragma: no cover - info query unavailable
            self.vmem_cap = 64 * 1024 * 1024  # v7x floor; safe on v5e/v6e too

        self.out_p = _round_up(out_size, 128)
        if hidden_tile is not None:
            self.tile_h = max(128, _round_up(int(hidden_tile), 128))
        else:
            self.tile_h = self._choose_hidden_tile()
        self.hid_p = _round_up(hidden, self.tile_h)

        bf16, f32 = jnp.bfloat16, jnp.float32
        # Pad + cast once (hoisted out of the per-call path). Padded rows/cols
        # are zero, so they contribute exactly 0 to every dot product.
        self.w1_p = jnp.zeros((in_size, self.hid_p), bf16).at[:, :hidden].set(
            w1.astype(bf16))
        self.b1_p = jnp.zeros((1, self.hid_p), f32).at[0, :hidden].set(b1)
        self.w2_p = jnp.zeros((self.hid_p, self.out_p), bf16).at[:hidden, :out_size].set(
            w2.astype(bf16))
        self.b2_p = jnp.zeros((1, self.out_p), f32).at[0, :out_size].set(b2)

        self._fwd_cache = {}

    # ---------------------------------------------------------------- sizing
    def _choose_hidden_tile(self) -> int:
        """Largest hidden chunk (multiple of 128) whose resident footprint fits."""
        in128 = _round_up(self.in_size, 128)
        in16 = _round_up(self.in_size, 16)
        out_p = self.out_p
        budget = int(0.55 * self.vmem_cap)  # headroom for Mosaic internal scratch
        tb = 512                            # conservative (largest) batch tile

        def need(th):
            return (2 * tb * in128 * 4          # x tiles   (f32, double-buffered)
                    + 2 * tb * out_p * 4        # out tiles (double-buffered)
                    + 2 * in16 * th * 2         # W1 chunk  (bf16, 2 buffers worst case)
                    + 2 * th * out_p * 2        # W2 chunk  (bf16, 2 buffers worst case)
                    + 2 * 8 * (th + out_p) * 4  # biases (sublane-padded rows)
                    + tb * th * 2               # h scratch (bf16)
                    + tb * out_p * 4)           # fc2 accumulator (f32)

        th = _round_up(self.hidden, 128)
        while th > 512 and need(th) > budget:
            th = _round_up((th + 1) // 2, 128)
        return th

    # ----------------------------------------------------------------- build
    def _build_forward(self, B: int, single_buffer_weights: bool):
        in_size, hid_p, out_p = self.in_size, self.hid_p, self.out_p
        out_size, tile_h = self.out_size, self.tile_h
        n_k = hid_p // tile_h
        tile_b = _pick_tile_b(B)
        n_b = -(-B // tile_b)
        B_p = n_b * tile_b

        f32, bf16 = jnp.float32, jnp.bfloat16
        in128 = _round_up(in_size, 128)
        in16 = _round_up(in_size, 16)
        out_bytes = np.dtype(self.out_dtype).itemsize

        # VMEM budget with double-buffered weights (worst case), so the
        # non-Buffered(1) fallback always fits the same limit.
        vmem_needed = (2 * tile_b * in128 * 4
                       + 2 * tile_b * out_p * out_bytes
                       + 2 * in16 * tile_h * 2
                       + 2 * tile_h * out_p * 2
                       + 2 * 8 * (tile_h + out_p) * 4
                       + tile_b * tile_h * 2
                       + (tile_b * out_p * 4 if n_k > 1 else 0))
        # Clamp to physical VMEM with ~10% headroom (64 MiB per TC on v7x);
        # no arbitrary 2x on top of an already double-buffered estimate.
        vmem_limit = min(int(0.9 * self.vmem_cap),
                         max(int(1.25 * vmem_needed), 32 * 1024 * 1024))

        cost = pl.CostEstimate(
            flops=2 * B_p * (in_size * hid_p + hid_p * out_p),
            transcendentals=0,
            bytes_accessed=int(B_p * in_size * 4
                               + in_size * hid_p * 2 + hid_p * out_p * 2
                               + (hid_p + out_p) * 4
                               + B_p * out_p * out_bytes),
        )

        # Resident (constant-index) weights: request single buffering so they
        # are not duplicated in VMEM. Only meaningful when the weight block is
        # constant across the whole grid (n_k == 1).
        wkw = {}
        if single_buffer_weights and n_k == 1:
            wkw = dict(pipeline_mode=pl.Buffered(1))

        if n_k == 1:
            grid_spec = pltpu.PrefetchScalarGridSpec(
                num_scalar_prefetch=0,
                grid=(n_b,),
                in_specs=[
                    pl.BlockSpec((tile_b, in_size), lambda i: (i, 0)),            # x (f32)
                    pl.BlockSpec((in_size, hid_p), lambda i: (0, 0), **wkw),      # W1
                    pl.BlockSpec((1, hid_p), lambda i: (0, 0), **wkw),            # b1
                    pl.BlockSpec((hid_p, out_p), lambda i: (0, 0), **wkw),        # W2
                    pl.BlockSpec((1, out_p), lambda i: (0, 0), **wkw),            # b2
                ],
                out_specs=pl.BlockSpec((tile_b, out_p), lambda i: (i, 0)),
                scratch_shapes=[pltpu.VMEM((tile_b, hid_p), bf16)],               # h
            )
            kernel = _ffn_kernel_resident
            semantics = ("parallel",)
        else:
            grid_spec = pltpu.PrefetchScalarGridSpec(
                num_scalar_prefetch=0,
                grid=(n_b, n_k),
                in_specs=[
                    pl.BlockSpec((tile_b, in_size), lambda i, k: (i, 0)),         # x (f32)
                    pl.BlockSpec((in_size, tile_h), lambda i, k: (0, k)),         # W1 chunk
                    pl.BlockSpec((1, tile_h), lambda i, k: (0, k)),               # b1 chunk
                    pl.BlockSpec((tile_h, out_p), lambda i, k: (k, 0)),           # W2 chunk
                    pl.BlockSpec((1, out_p), lambda i, k: (0, 0)),                # b2
                ],
                out_specs=pl.BlockSpec((tile_b, out_p), lambda i, k: (i, 0)),
                scratch_shapes=[pltpu.VMEM((tile_b, tile_h), bf16),               # h
                                pltpu.VMEM((tile_b, out_p), f32)],                # fc2 acc
            )
            kernel = _ffn_kernel_hidden_tiled
            semantics = ("parallel", "arbitrary")

        call = pl.pallas_call(
            kernel,
            out_shape=jax.ShapeDtypeStruct((B_p, out_p), self.out_dtype),
            grid_spec=grid_spec,
            compiler_params=pltpu.CompilerParams(
                dimension_semantics=semantics,
                vmem_limit_bytes=vmem_limit),
            cost_estimate=cost,
        )

        def fwd(x, w1_p, b1_p, w2_p, b2_p):
            x = x.astype(jnp.float32)
            if B_p != B:
                # Pad batch rows only; the feature dim stays untouched (the f32
                # tile is DMA'd as-is, cast to bf16 inside the kernel).
                x = jnp.zeros((B_p, in_size), jnp.float32).at[:B, :].set(x)
            y = call(x, w1_p, b1_p, w2_p, b2_p)
            return y[:B, :out_size]

        return jax.jit(fwd)

    # ------------------------------------------------------------------ call
    def __call__(self, x):
        B = int(x.shape[0])
        fwd = self._fwd_cache.get(B)
        if fwd is not None:
            return fwd(x, self.w1_p, self.b1_p, self.w2_p, self.b2_p)
        # First call at this batch size: try single-buffered resident weights;
        # if the installed JAX/Mosaic rejects Buffered(1), retry with default
        # double buffering (the VMEM budget already assumes 2 weight buffers).
        for single in (True, False):
            try:
                fwd = self._build_forward(B, single_buffer_weights=single)
                out = fwd(x, self.w1_p, self.b1_p, self.w2_p, self.b2_p)
            except Exception:
                if not single:
                    raise          # fallback also failed: surface the real error
                continue           # Buffered(1) rejected: retry without it
            self._fwd_cache[B] = fwd
            return out
        raise RuntimeError("unreachable")  # pragma: no cover


if __name__ == "__main__":
    # Small shapes consistent with the module: x is [batch, input_size].
    batch, input_size, hidden_size, output_size = 8, 32, 64, 16

    key = jax.random.PRNGKey(0)
    kx, k1, k2, k3, k4 = jax.random.split(key, 5)
    lim1 = 1.0 / jnp.sqrt(input_size)
    lim2 = 1.0 / jnp.sqrt(hidden_size)
    x = jax.random.normal(kx, (batch, input_size), jnp.float32)
    # Weights stored in [in, out] layout (== PyTorch weight.T), nn.Linear-style init.
    w1 = jax.random.uniform(k1, (input_size, hidden_size), jnp.float32, -lim1, lim1)
    b1 = jax.random.uniform(k2, (hidden_size,), jnp.float32, -lim1, lim1)
    w2 = jax.random.uniform(k3, (hidden_size, output_size), jnp.float32, -lim2, lim2)
    b2 = jax.random.uniform(k4, (output_size,), jnp.float32, -lim2, lim2)

    model = FFNClassifierPallas(w1, b1, w2, b2)
    out = jax.block_until_ready(model(x))
    assert out.shape == (batch, output_size)

    # Reference matching the kernel's math (bf16 matmul operands, f32 accumulate).
    bf16 = jnp.bfloat16
    h_ref = jnp.maximum(
        jnp.dot(x.astype(bf16), w1.astype(bf16),
                preferred_element_type=jnp.float32) + b1, 0.0)
    ref_bf16 = jnp.dot(h_ref.astype(bf16), w2.astype(bf16),
                       preferred_element_type=jnp.float32) + b2
    assert jnp.allclose(out, ref_bf16, atol=2e-3, rtol=2e-3), "mismatch vs bf16 ref"

    # Sanity check vs the full-f32 PyTorch-equivalent forward (loose tol for bf16).
    ref_f32 = jnp.maximum(x @ w1 + b1, 0.0) @ w2 + b2
    assert jnp.allclose(out, ref_f32, atol=5e-2, rtol=5e-2), "mismatch vs f32 ref"

    # Cached-forward path (no rebuild / re-trace on the second call).
    out_again = jax.block_until_ready(model(x))
    assert jnp.allclose(out_again, out), "cached path mismatch"

    # Larger batch with odd sizes: multi-step pipelined grid (tile_b=128 -> 9
    # steps) with lane-padded hidden/output dims sliced off in the wrapper.
    B2, I2, H2, O2 = 1056, 200, 384, 10
    kx2, kw = jax.random.split(jax.random.PRNGKey(1))
    ka, kb, kc, kd = jax.random.split(kw, 4)
    x2 = jax.random.normal(kx2, (B2, I2), jnp.float32)
    w1b = jax.random.uniform(ka, (I2, H2), jnp.float32, -0.05, 0.05)
    b1b = jax.random.uniform(kb, (H2,), jnp.float32, -0.05, 0.05)
    w2b = jax.random.uniform(kc, (H2, O2), jnp.float32, -0.05, 0.05)
    b2b = jax.random.uniform(kd, (O2,), jnp.float32, -0.05, 0.05)
    ref2 = jnp.maximum(x2 @ w1b + b1b, 0.0) @ w2b + b2b

    model2 = FFNClassifierPallas(w1b, b1b, w2b, b2b)
    out2 = jax.block_until_ready(model2(x2))
    assert out2.shape == (B2, O2)
    assert jnp.allclose(out2, ref2, atol=5e-2, rtol=5e-2), "mismatch (tiled batch)"

    # Force the hidden-dimension-tiled path (2-D grid, fc2 accumulator) that
    # large models would take on v7x's 64 MiB VMEM.
    model3 = FFNClassifierPallas(w1b, b1b, w2b, b2b, hidden_tile=128)
    out3 = jax.block_until_ready(model3(x2))
    assert jnp.allclose(out3, ref2, atol=5e-2, rtol=5e-2), "mismatch (hidden-tiled)"

    print("KERNEL_OK")
</pallas_src>

<mosaic_0001>
module attributes {stable_mosaic.version = 11 : i64} {
  func.func @_ffn_kernel_resident(%arg0: i32, %arg1: memref<8x32xf32, #tpu.memory_space<vmem>>, %arg2: memref<32x128xbf16, #tpu.memory_space<vmem>>, %arg3: memref<1x128xf32, #tpu.memory_space<vmem>>, %arg4: memref<128x128xbf16, #tpu.memory_space<vmem>>, %arg5: memref<1x128xf32, #tpu.memory_space<vmem>>, %arg6: memref<8x128xf32, #tpu.memory_space<vmem>>, %arg7: memref<8x128xbf16, #tpu.memory_space<vmem>>) attributes {dimension_semantics = [#tpu.dimension_semantics<parallel>], iteration_bounds = array<i64: 1>, scalar_prefetch = 0 : i64, scratch_operands = 1 : i64, tpu.core_type = #tpu.core_type<tc>, window_params = [{transform_indices = @transform_0, window_bounds = array<i64: 8, 32>}, {pipeline_mode = #tpu.pipeline_mode<synchronous>, transform_indices = @transform_1, window_bounds = array<i64: 32, 128>}, {pipeline_mode = #tpu.pipeline_mode<synchronous>, transform_indices = @transform_2, window_bounds = array<i64: 1, 128>}, {pipeline_mode = #tpu.pipeline_mode<synchronous>, transform_indices = @transform_3, window_bounds = array<i64: 128, 128>}, {pipeline_mode = #tpu.pipeline_mode<synchronous>, transform_indices = @transform_4, window_bounds = array<i64: 1, 128>}, {transform_indices = @transform_5, window_bounds = array<i64: 8, 128>}]} {
    %c0 = arith.constant 0 : index
    %c0_0 = arith.constant 0 : index
    %0 = vector.load %arg1[%c0, %c0_0] : memref<8x32xf32, #tpu.memory_space<vmem>>, vector<8x32xf32>
    %1 = arith.truncf %0 : vector<8x32xf32> to vector<8x32xbf16>
    %c0_1 = arith.constant 0 : index
    %c0_2 = arith.constant 0 : index
    %2 = vector.load %arg2[%c0_1, %c0_2] : memref<32x128xbf16, #tpu.memory_space<vmem>>, vector<32x128xbf16>
    %cst = arith.constant dense<0.000000e+00> : vector<8x128xf32>
    %3 = tpu.matmul %1, %2, %cst {dimension_numbers = #tpu.dot_dimension_numbers<[1], [0], [0], [1], [0, 0, 1, 1], [], []>} : vector<8x32xbf16>, vector<32x128xbf16>, vector<8x128xf32> -> vector<8x128xf32>
    %c0_3 = arith.constant 0 : index
    %c0_4 = arith.constant 0 : index
    %4 = vector.load %arg3[%c0_3, %c0_4] : memref<1x128xf32, #tpu.memory_space<vmem>>, vector<1x128xf32>
    %5 = vector.broadcast %4 : vector<1x128xf32> to vector<8x128xf32>
    %6 = arith.addf %3, %5 : vector<8x128xf32>
    %cst_5 = arith.constant 0.000000e+00 : f32
    %7 = vector.broadcast %cst_5 : f32 to vector<8x128xf32>
    %8 = arith.maximumf %6, %7 : vector<8x128xf32>
    %9 = arith.truncf %8 : vector<8x128xf32> to vector<8x128xbf16>
    %c0_6 = arith.constant 0 : index
    %c0_7 = arith.constant 0 : index
    %10 = vector.load %arg7[%c0_6, %c0_7] : memref<8x128xbf16, #tpu.memory_space<vmem>>, vector<8x128xbf16>
    tpu.vector_store %arg7[%c0_6, %c0_7], %9 {strides = array<i32>} : memref<8x128xbf16, #tpu.memory_space<vmem>>, vector<8x128xbf16>,
    %c0_8 = arith.constant 0 : index
    %c0_9 = arith.constant 0 : index
    %11 = vector.load %arg7[%c0_8, %c0_9] : memref<8x128xbf16, #tpu.memory_space<vmem>>, vector<8x128xbf16>
    %c0_10 = arith.constant 0 : index
    %c0_11 = arith.constant 0 : index
    %12 = vector.load %arg4[%c0_10, %c0_11] : memref<128x128xbf16, #tpu.memory_space<vmem>>, vector<128x128xbf16>
    %cst_12 = arith.constant dense<0.000000e+00> : vector<8x128xf32>
    %13 = tpu.matmul %11, %12, %cst_12 {dimension_numbers = #tpu.dot_dimension_numbers<[1], [0], [0], [1], [0, 0, 1, 1], [], []>} : vector<8x128xbf16>, vector<128x128xbf16>, vector<8x128xf32> -> vector<8x128xf32>
    %c0_13 = arith.constant 0 : index
    %c0_14 = arith.constant 0 : index
    %14 = vector.load %arg5[%c0_13, %c0_14] : memref<1x128xf32, #tpu.memory_space<vmem>>, vector<1x128xf32>
    %15 = vector.broadcast %14 : vector<1x128xf32> to vector<8x128xf32>
    %16 = arith.addf %13, %15 : vector<8x128xf32>
    %c0_15 = arith.constant 0 : index
    %c0_16 = arith.constant 0 : index
    %17 = vector.load %arg6[%c0_15, %c0_16] : memref<8x128xf32, #tpu.memory_space<vmem>>, vector<8x128xf32>
    tpu.vector_store %arg6[%c0_15, %c0_16], %16 {strides = array<i32>} : memref<8x128xf32, #tpu.memory_space<vmem>>, vector<8x128xf32>,
    return
  }
  func.func @transform_0(%arg0: i32) -> (i32, i32) {
    %c0_i32 = arith.constant 0 : i32
    %c0_i32_0 = arith.constant 0 : i32
    return %arg0, %c0_i32 : i32, i32
  }
  func.func @transform_1(%arg0: i32) -> (i32, i32) {
    %c0_i32 = arith.constant 0 : i32
    %c0_i32_0 = arith.constant 0 : i32
    %c0_i32_1 = arith.constant 0 : i32
    return %c0_i32, %c0_i32_0 : i32, i32
  }
  func.func @transform_2(%arg0: i32) -> (i32, i32) {
    %c0_i32 = arith.constant 0 : i32
    %c0_i32_0 = arith.constant 0 : i32
    %c0_i32_1 = arith.constant 0 : i32
    return %c0_i32, %c0_i32_0 : i32, i32
  }
  func.func @transform_3(%arg0: i32) -> (i32, i32) {
    %c0_i32 = arith.constant 0 : i32
    %c0_i32_0 = arith.constant 0 : i32
    %c0_i32_1 = arith.constant 0 : i32
    return %c0_i32, %c0_i32_0 : i32, i32
  }
  func.func @transform_4(%arg0: i32) -> (i32, i32) {
    %c0_i32 = arith.constant 0 : i32
    %c0_i32_0 = arith.constant 0 : i32
    %c0_i32_1 = arith.constant 0 : i32
    return %c0_i32, %c0_i32_0 : i32, i32
  }
  func.func @transform_5(%arg0: i32) -> (i32, i32) {
    %c0_i32 = arith.constant 0 : i32
    %c0_i32_0 = arith.constant 0 : i32
    return %arg0, %c0_i32 : i32, i32
  }
}

module attributes {stable_mosaic.version = 11 : i64} {
  func.func @_ffn_kernel_resident(%arg0: i32, %arg1: memref<8x32xf32, #tpu.memory_space<vmem>>, %arg2: memref<32x128xbf16, #tpu.memory_space<vmem>>, %arg3: memref<1x128xf32, #tpu.memory_space<vmem>>, %arg4: memref<128x128xbf16, #tpu.memory_space<vmem>>, %arg5: memref<1x128xf32, #tpu.memory_space<vmem>>, %arg6: memref<8x128xf32, #tpu.memory_space<vmem>>, %arg7: memref<8x128xbf16, #tpu.memory_space<vmem>>) attributes {dimension_semantics = [#tpu.dimension_semantics<parallel>], iteration_bounds = array<i64: 1>, scalar_prefetch = 0 : i64, scratch_operands = 1 : i64, tpu.core_type = #tpu.core_type<tc>, window_params = [{transform_indices = @transform_0, window_bounds = array<i64: 8, 32>}, {pipeline_mode = #tpu.pipeline_mode<synchronous>, transform_indices = @transform_1, window_bounds = array<i64: 32, 128>}, {pipeline_mode = #tpu.pipeline_mode<synchronous>, transform_indices = @transform_2, window_bounds = array<i64: 1, 128>}, {pipeline_mode = #tpu.pipeline_mode<synchronous>, transform_indices = @transform_3, window_bounds = array<i64: 128, 128>}, {pipeline_mode = #tpu.pipeline_mode<synchronous>, transform_indices = @transform_4, window_bounds = array<i64: 1, 128>}, {transform_indices = @transform_5, window_bounds = array<i64: 8, 128>}]} {
    %c0 = arith.constant 0 : index
    %c0_0 = arith.constant 0 : index
    %0 = vector.load %arg1[%c0, %c0_0] : memref<8x32xf32, #tpu.memory_space<vmem>>, vector<8x32xf32>
    %1 = arith.truncf %0 : vector<8x32xf32> to vector<8x32xbf16>
    %c0_1 = arith.constant 0 : index
    %c0_2 = arith.constant 0 : index
    %2 = vector.load %arg2[%c0_1, %c0_2] : memref<32x128xbf16, #tpu.memory_space<vmem>>, vector<32x128xbf16>
    %cst = arith.constant dense<0.000000e+00> : vector<8x128xf32>
    %3 = tpu.matmul %1, %2, %cst {dimension_numbers = #tpu.dot_dimension_numbers<[1], [0], [0], [1], [0, 0, 1, 1], [], []>} : vector<8x32xbf16>, vector<32x128xbf16>, vector<8x128xf32> -> vector<8x128xf32>
    %c0_3 = arith.constant 0 : index
    %c0_4 = arith.constant 0 : index
    %4 = vector.load %arg3[%c0_3, %c0_4] : memref<1x128xf32, #tpu.memory_space<vmem>>, vector<1x128xf32>
    %5 = vector.broadcast %4 : vector<1x128xf32> to vector<8x128xf32>
    %6 = arith.addf %3, %5 : vector<8x128xf32>
    %cst_5 = arith.constant 0.000000e+00 : f32
    %7 = vector.broadcast %cst_5 : f32 to vector<8x128xf32>
    %8 = arith.maximumf %6, %7 : vector<8x128xf32>
    %9 = arith.truncf %8 : vector<8x128xf32> to vector<8x128xbf16>
    %c0_6 = arith.constant 0 : index
    %c0_7 = arith.constant 0 : index
    %10 = vector.load %arg7[%c0_6, %c0_7] : memref<8x128xbf16, #tpu.memory_space<vmem>>, vector<8x128xbf16>
    tpu.vector_store %arg7[%c0_6, %c0_7], %9 {strides = array<i32>} : memref<8x128xbf16, #tpu.memory_space<vmem>>, vector<8x128xbf16>,
    %c0_8 = arith.constant 0 : index
    %c0_9 = arith.constant 0 : index
    %11 = vector.load %arg7[%c0_8, %c0_9] : memref<8x128xbf16, #tpu.memory_space<vmem>>, vector<8x128xbf16>
    %c0_10 = arith.constant 0 : index
    %c0_11 = arith.constant 0 : index
    %12 = vector.load %arg4[%c0_10, %c0_11] : memref<128x128xbf16, #tpu.memory_space<vmem>>, vector<128x128xbf16>
    %cst_12 = arith.constant dense<0.000000e+00> : vector<8x128xf32>
    %13 = tpu.matmul %11, %12, %cst_12 {dimension_numbers = #tpu.dot_dimension_numbers<[1], [0], [0], [1], [0, 0, 1, 1], [], []>} : vector<8x128xbf16>, vector<128x128xbf16>, vector<8x128xf32> -> vector<8x128xf32>
    %c0_13 = arith.constant 0 : index
    %c0_14 = arith.constant 0 : index
    %14 = vector.load %arg5[%c0_13, %c0_14] : memref<1x128xf32, #tpu.memory_space<vmem>>, vector<1x128xf32>
    %15 = vector.broadcast %14 : vector<1x128xf32> to vector<8x128xf32>
    %16 = arith.addf %13, %15 : vector<8x128xf32>
    %c0_15 = arith.constant 0 : index
    %c0_16 = arith.constant 0 : index
    %17 = vector.load %arg6[%c0_15, %c0_16] : memref<8x128xf32, #tpu.memory_space<vmem>>, vector<8x128xf32>
    tpu.vector_store %arg6[%c0_15, %c0_16], %16 {strides = array<i32>} : memref<8x128xf32, #tpu.memory_space<vmem>>, vector<8x128xf32>,
    return
  }
  func.func @transform_0(%arg0: i32) -> (i32, i32) {
    %c0_i32 = arith.constant 0 : i32
    %c0_i32_0 = arith.constant 0 : i32
    return %arg0, %c0_i32 : i32, i32
  }
  func.func @transform_1(%arg0: i32) -> (i32, i32) {
    %c0_i32 = arith.constant 0 : i32
    %c0_i32_0 = arith.constant 0 : i32
    %c0_i32_1 = arith.constant 0 : i32
    return %c0_i32, %c0_i32_0 : i32, i32
  }
  func.func @transform_2(%arg0: i32) -> (i32, i32) {
    %c0_i32 = arith.constant 0 : i32
    %c0_i32_0 = arith.constant 0 : i32
    %c0_i32_1 = arith.constant 0 : i32
    return %c0_i32, %c0_i32_0 : i32, i32
  }
  func.func @transform_3(%arg0: i32) -> (i32, i32) {
    %c0_i32 = arith.constant 0 : i32
    %c0_i32_0 = arith.constant 0 : i32
    %c0_i32_1 = arith.constant 0 : i32
    return %c0_i32, %c0_i32_0 : i32, i32
  }
  func.func @transform_4(%arg0: i32) -> (i32, i32) {
    %c0_i32 = arith.constant 0 : i32
    %c0_i32_0 = arith.constant 0 : i32
    %c0_i32_1 = arith.constant 0 : i32
    return %c0_i32, %c0_i32_0 : i32, i32
  }
  func.func @transform_5(%arg0: i32) -> (i32, i32) {
    %c0_i32 = arith.constant 0 : i32
    %c0_i32_0 = arith.constant 0 : i32
    return %arg0, %c0_i32 : i32, i32
  }
}

</mosaic_0001>

<bundles_post_ra>
// kernel: fwd.1
= control target key start
LH: loop header
LB: loop body
LE: loop exit
PB: predicated region body
PF: predicated region fallthrough
CT: control target
= control target key end

     0   :  { %10 = vsyncpa [#allocation4], 0  ;;  %s475_s0 = inlined_call_operand.hbm [shape: f32[8,32], index: 0, kind: input, shape index: {}]   ;;  %s476_s1 = inlined_call_operand.hbm [shape: bf16[32,128], index: 1, kind: input, shape index: {}]   ;;  %s477_s2 = inlined_call_operand.vmem [shape: f32[1,128], index: 2, kind: input, shape index: {}]   ;;  %s478_s3 = inlined_call_operand.hbm [shape: bf16[128,128], index: 3, kind: input, shape index: {}]   ;;  %s479_s4 = inlined_call_operand.vmem [shape: f32[1,128], index: 4, kind: input, shape index: {}]   ;;  %s480_s5 = inlined_call_operand.hbm [shape: f32[8,128], index: 5, kind: output, shape index: {}]  }
   0x1   :  { %11 = vsyncpa [#allocation7], 0 }
   0x2   :  { %12 = vsyncpa [#allocation5], 0  ;;  %s419_s18 = smov [#allocation6]  }
   0x3   :  { %s28_s19 = sshll.u32 %s419_s18, 4  ;;  %s29_s19 = int_to_ptr.vmem [resolvable:$true] %s28_s19 }
   0x4   :  { %s341_s20 = scalar_lea.vmem %s29_s19, 256  ;;  %p346_p1 = scmp.lt.s32.totalorder %s29_s19, %s29_s19 }
   0x5   :  { %p342_p0 = scmp.ne.s32.totalorder %s29_s19, %s341_s20  ;;  %p347_p2 = scmp.lt.s32.totalorder %s341_s20, %s341_s20 }
   0x7   :  { %p348_p3 = por %p347_p2, %p346_p1 }
   0x9   :  { %p349_p4 = pnand %p348_p3, %p342_p0 }
   0xb   :  { %352 = shalt.err (!%p349_p4)
}
   0xc   :  { %s420_s21 = smov 64   ;;  %s421_s22 = smov 4  }
   0xd   :  { %34 = dma.hbm_to_vmem [thread:$0]  %s476_s1, 256, %s29_s19, [#allocation7], %s420_s21, %s420_s21, %s421_s22  }
   0xe   :  { %s422_s25 = smov [#allocation3]   ;;  %s423_s27 = smov [#allocation8]  }
   0xf   :  { %s19_s26 = sshll.u32 %s422_s25, 4  ;;  %s42_s28 = sshll.u32 %s423_s27, 4  ;;  %s20_s26 = int_to_ptr.vmem [resolvable:$true] %s19_s26  ;;  %s43_s28 = int_to_ptr.vmem [resolvable:$true] %s42_s28 }
  0x10   :  { %s361_s29 = scalar_lea.vmem %s20_s26, 128  ;;  %p366_p6 = scmp.lt.s32.totalorder %s20_s26, %s20_s26 }
  0x11   :  { %p362_p5 = scmp.ne.s32.totalorder %s20_s26, %s361_s29  ;;  %p367_p7 = scmp.lt.s32.totalorder %s361_s29, %s361_s29 }
  0x13   :  { %p368_p8 = por %p367_p7, %p366_p6 }
  0x15   :  { %p369_p9 = pnand %p368_p8, %p362_p5 }
  0x17   :  { %372 = shalt.err (!%p369_p9)
}
  0x18   :  { %22 = dma.hbm_to_vmem [thread:$0]  %s475_s0, 128, %s20_s26, [#allocation4]  }
  0x19   :  { %s381_s7 = scalar_lea.vmem %s43_s28, 1024  ;;  %p386_p11 = scmp.lt.s32.totalorder %s43_s28, %s43_s28 }
  0x1a   :  { %p382_p10 = scmp.ne.s32.totalorder %s43_s28, %s381_s7  ;;  %p387_p12 = scmp.lt.s32.totalorder %s381_s7, %s381_s7 }
  0x1c   :  { %p388_p13 = por %p387_p12, %p386_p11 }
  0x1e   :  { %p389_p0 = pnand %p388_p13, %p382_p10 }
  0x20   :  { %392 = shalt.err (!%p389_p0)
}
  0x21   :  { %48 = dma.hbm_to_vmem [thread:$0]  %s478_s3, 1024, %s43_s28, [#allocation7], %s420_s21, %s420_s21, %s421_s22  }
  0x22   :  { %413 = dma.done.wait [#allocation4], 128  }
  0x23   :  { %414 = vsyncadd [#allocation4], 4294967168 }
  0x24   :  { %415 = dma.done.wait [#allocation7], 1280  }
  0x25   :  { %416 = vsyncadd [#allocation7], 4294966016  ;;  %v424_v0 = vmov 0.0   ;;  %vm425_vm0 = vmmov 0   ;;  %v323_v1 = vld [vmem:[#allocation6 + $0x8] sm:$0xff]   ;;  %v324_v2 = vld [vmem:[#allocation6] sm:$0xff]  }
  0x26   :  { %287 = vmatprep.subr.bf16.mxu0 %v424_v0  ;;  %291 = vmatprep.mubr.msk.bf16.mxu0 %vm425_vm0, %v424_v0  ;;  %v61_v3 = vld [vmem:[#allocation3] sm:$0xff]  ;;  %v325_v4 = vld [vmem:[#allocation8 + $0x38] sm:$0xff]   ;;  %v326_v6 = vld [vmem:[#allocation8 + $0x30] sm:$0xff]   ;;  %vm86_vm1 = vcmask 261120   ;;  %s426_s11 = smov [#allocation9]  }
  0x27   :  { %295 = vmatprep.subr.bf16.mxu1 %v424_v0  ;;  %311 = vmatprep.mubr.msk.bf16.mxu1 %vm425_vm0, %v424_v0  ;;  %v62_v5 = vpack.c.bf16 %v61_v3, %v61_v3  ;;  %v327_v7 = vld [vmem:[#allocation8 + $0x28] sm:$0xff]   ;;  %v328_v8 = vld [vmem:[#allocation8 + $0x20] sm:$0xff]   ;;  %v329_v9 = vld [vmem:[#allocation8 + $0x18] sm:$0xff]   ;;  %s252_s12 = sshll.u32 %s426_s11, 4  ;;  %s253_s12 = int_to_ptr.vmem [resolvable:$true] %s252_s12 }
  0x28   :  { %288 = vmatpush3.bf16.msra.mxu0 %v323_v1  ;;  %296 = vmatpush3.bf16.msra.mxu1 %v325_v4  ;;  %v330_v10 = vld [vmem:[#allocation8 + $0x10] sm:$0xff]   ;;  %v331_v11 = vld [vmem:[#allocation8 + $0x8] sm:$0xff]   ;;  %v332_v12 = vld [vmem:[#allocation8] sm:$0xff]   ;;  %p398_p2 = scmp.lt.s32.totalorder %s253_s12, %s253_s12 }
  0x29   :  { %289 = vmatprep.subr.bf16.mxu0 %v424_v0  ;;  %297 = vmatprep.subr.bf16.mxu1 %v424_v0  ;;  %v262_v13 = vld [vmem:[%s477_s2] ss:$0 sm:$0xff]  ;;  %s393_s2 = scalar_lea.vmem %s253_s12, 128 }
  0x2a   :  { %v266_v22 = vld [vmem:[%s479_s4] ss:$0 sm:$0xff]  ;;  %p394_p1 = scmp.ne.s32.totalorder %s253_s12, %s393_s2  ;;  %p399_p3 = scmp.lt.s32.totalorder %s393_s2, %s393_s2 }
  0x2c   :  { %290 = vmatpush3.bf16.msra.mxu0 %v324_v2  ;;  %298 = vmatpush3.bf16.msra.mxu1 %v326_v6  ;;  %p400_p4 = por %p399_p3, %p398_p2 }
  0x2d   :  { %299 = vmatprep.subr.bf16.mxu1 %v424_v0 }
  0x2e   :  { %p401_p5 = pnand %p400_p4, %p394_p1 }
  0x2f   :  { %292 = vmatmul.mubr.msk.bf16.vlgmr.msra.gmra.mxu0 %vm86_vm1, %v62_v5 }
  0x30   :  { %300 = vmatpush3.bf16.msra.mxu1 %v327_v7 }
  0x31   :  { %301 = vmatprep.subr.bf16.mxu1 %v424_v0 }
  0x34   :  { %302 = vmatpush3.bf16.msra.mxu1 %v328_v8 }
  0x35   :  { %303 = vmatprep.subr.bf16.mxu1 %v424_v0 }
  0x38   :  { %304 = vmatpush3.bf16.msra.mxu1 %v329_v9 }
  0x39   :  { %305 = vmatprep.subr.bf16.mxu1 %v424_v0 }
  0x3c   :  { %306 = vmatpush3.bf16.msra.mxu1 %v330_v10 }
  0x3d   :  { %307 = vmatprep.subr.bf16.mxu1 %v424_v0 }
  0x40   :  { %308 = vmatpush3.bf16.msra.mxu1 %v331_v11 }
  0x41   :  { %309 = vmatprep.subr.bf16.mxu1 %v424_v0 }
  0x44   :  { %310 = vmatpush3.bf16.msra.mxu1 %v332_v12 }
  0xef   :  { %v124_v14 = vpop.f32.mrf.mxu0 }
  0xf0   :  { %v125_v15 = vadd.f32 %v262_v13, %v124_v14 }
  0xf1   :  { %v293_v16 = vpop.f32.mrf.mxu0 }
  0xf2   :  { %v130_v17 = vmax.f32 %v125_v15, 0.0 }
  0xf3   :  { %v127_v18 = vpop.f32.mrf.mxu0 }
  0xf4   :  { %v131_v19 = vpack.c.bf16 %v130_v17, %v130_v17 }
  0xf5   :  { %v294_v20 = vpop.f32.mrf.mxu0 }
  0xf6   :  { %132 = vst [vmem:[#allocation2] sm:$0xf] %v131_v19 }
  0xfd   :  { %v133_v21 = vld [vmem:[#allocation2] sm:$0xf] }
  0xfe   :  { %312 = vmatmul.mubr.bf16.vlgmr.msra.gmra.mxu1 %v133_v21 }
 0x1be   :  { %v239_v23 = vpop.f32.mrf.mxu1 }
 0x1bf   :  { %v240_v24 = vadd.f32 %v266_v22, %v239_v23 }
 0x1c0   :  { %v313_v25 = vpop.f32.mrf.mxu1 }
 0x1c1   :  { %245 = vst [vmem:[#allocation9] sm:$0xff] %v240_v24 }
 0x1c2   :  { %v242_v26 = vpop.f32.mrf.mxu1 }
 0x1c3   :  { %404 = shalt.err (!%p401_p5)
}
 0x1c4   :  { %255 = dma.vmem_to_hbm [thread:$0]  %s253_s12, 128, %s480_s5, [#allocation5]   ;;  %v314_v27 = vpop.f32.mrf.mxu1 }
 0x1c5   :  { %417 = dma.done.wait [#allocation5], 128  }
 0x1c6   :  { %418 = vsyncadd [#allocation5], 4294967168 }
 0x1c7   :  { %259 = vsyncpa [#allocation4], 1 }
 0x1c8   :  { %260 = vsyncpa [#allocation7], 1 }
 0x1c9   :  { %261 = vsyncpa [#allocation5], 1 }

// kernel: fwd.1
= control target key start
LH: loop header
LB: loop body
LE: loop exit
PB: predicated region body
PF: predicated region fallthrough
CT: control target
= control target key end

     0   :  { %10 = vsyncpa [#allocation4], 0  ;;  %s475_s0 = inlined_call_operand.hbm [shape: f32[8,32], index: 0, kind: input, shape index: {}]   ;;  %s476_s1 = inlined_call_operand.hbm [shape: bf16[32,128], index: 1, kind: input, shape index: {}]   ;;  %s477_s2 = inlined_call_operand.vmem [shape: f32[1,128], index: 2, kind: input, shape index: {}]   ;;  %s478_s3 = inlined_call_operand.hbm [shape: bf16[128,128], index: 3, kind: input, shape index: {}]   ;;  %s479_s4 = inlined_call_operand.vmem [shape: f32[1,128], index: 4, kind: input, shape index: {}]   ;;  %s480_s5 = inlined_call_operand.hbm [shape: f32[8,128], index: 5, kind: output, shape index: {}]  }
   0x1   :  { %11 = vsyncpa [#allocation7], 0 }
   0x2   :  { %12 = vsyncpa [#allocation5], 0  ;;  %s419_s18 = smov [#allocation6]  }
   0x3   :  { %s28_s19 = sshll.u32 %s419_s18, 4  ;;  %s29_s19 = int_to_ptr.vmem [resolvable:$true] %s28_s19 }
   0x4   :  { %s341_s20 = scalar_lea.vmem %s29_s19, 256  ;;  %p346_p1 = scmp.lt.s32.totalorder %s29_s19, %s29_s19 }
   0x5   :  { %p342_p0 = scmp.ne.s32.totalorder %s29_s19, %s341_s20  ;;  %p347_p2 = scmp.lt.s32.totalorder %s341_s20, %s341_s20 }
   0x7   :  { %p348_p3 = por %p347_p2, %p346_p1 }
   0x9   :  { %p349_p4 = pnand %p348_p3, %p342_p0 }
   0xb   :  { %352 = shalt.err (!%p349_p4)
}
   0xc   :  { %s420_s21 = smov 64   ;;  %s421_s22 = smov 4  }
   0xd   :  { %34 = dma.hbm_to_vmem [thread:$0]  %s476_s1, 256, %s29_s19, [#allocation7], %s420_s21, %s420_s21, %s421_s22  }
   0xe   :  { %s422_s25 = smov [#allocation3]   ;;  %s423_s27 = smov [#allocation8]  }
   0xf   :  { %s19_s26 = sshll.u32 %s422_s25, 4  ;;  %s42_s28 = sshll.u32 %s423_s27, 4  ;;  %s20_s26 = int_to_ptr.vmem [resolvable:$true] %s19_s26  ;;  %s43_s28 = int_to_ptr.vmem [resolvable:$true] %s42_s28 }
  0x10   :  { %s361_s29 = scalar_lea.vmem %s20_s26, 128  ;;  %p366_p6 = scmp.lt.s32.totalorder %s20_s26, %s20_s26 }
  0x11   :  { %p362_p5 = scmp.ne.s32.totalorder %s20_s26, %s361_s29  ;;  %p367_p7 = scmp.lt.s32.totalorder %s361_s29, %s361_s29 }
  0x13   :  { %p368_p8 = por %p367_p7, %p366_p6 }
  0x15   :  { %p369_p9 = pnand %p368_p8, %p362_p5 }
  0x17   :  { %372 = shalt.err (!%p369_p9)
}
  0x18   :  { %22 = dma.hbm_to_vmem [thread:$0]  %s475_s0, 128, %s20_s26, [#allocation4]  }
  0x19   :  { %s381_s7 = scalar_lea.vmem %s43_s28, 1024  ;;  %p386_p11 = scmp.lt.s32.totalorder %s43_s28, %s43_s28 }
  0x1a   :  { %p382_p10 = scmp.ne.s32.totalorder %s43_s28, %s381_s7  ;;  %p387_p12 = scmp.lt.s32.totalorder %s381_s7, %s381_s7 }
  0x1c   :  { %p388_p13 = por %p387_p12, %p386_p11 }
  0x1e   :  { %p389_p0 = pnand %p388_p13, %p382_p10 }
  0x20   :  { %392 = shalt.err (!%p389_p0)
}
  0x21   :  { %48 = dma.hbm_to_vmem [thread:$0]  %s478_s3, 1024, %s43_s28, [#allocation7], %s420_s21, %s420_s21, %s421_s22  }
  0x22   :  { %413 = dma.done.wait [#allocation4], 128  }
  0x23   :  { %414 = vsyncadd [#allocation4], 4294967168 }
  0x24   :  { %415 = dma.done.wait [#allocation7], 1280  }
  0x25   :  { %416 = vsyncadd [#allocation7], 4294966016  ;;  %v424_v0 = vmov 0.0   ;;  %vm425_vm0 = vmmov 0   ;;  %v323_v1 = vld [vmem:[#allocation6 + $0x8] sm:$0xff]   ;;  %v324_v2 = vld [vmem:[#allocation6] sm:$0xff]  }
  0x26   :  { %287 = vmatprep.subr.bf16.mxu0 %v424_v0  ;;  %291 = vmatprep.mubr.msk.bf16.mxu0 %vm425_vm0, %v424_v0  ;;  %v61_v3 = vld [vmem:[#allocation3] sm:$0xff]  ;;  %v325_v4 = vld [vmem:[#allocation8 + $0x38] sm:$0xff]   ;;  %v326_v6 = vld [vmem:[#allocation8 + $0x30] sm:$0xff]   ;;  %vm86_vm1 = vcmask 261120   ;;  %s426_s11 = smov [#allocation9]  }
  0x27   :  { %295 = vmatprep.subr.bf16.mxu1 %v424_v0  ;;  %311 = vmatprep.mubr.msk.bf16.mxu1 %vm425_vm0, %v424_v0  ;;  %v62_v5 = vpack.c.bf16 %v61_v3, %v61_v3  ;;  %v327_v7 = vld [vmem:[#allocation8 + $0x28] sm:$0xff]   ;;  %v328_v8 = vld [vmem:[#allocation8 + $0x20] sm:$0xff]   ;;  %v329_v9 = vld [vmem:[#allocation8 + $0x18] sm:$0xff]   ;;  %s252_s12 = sshll.u32 %s426_s11, 4  ;;  %s253_s12 = int_to_ptr.vmem [resolvable:$true] %s252_s12 }
  0x28   :  { %288 = vmatpush3.bf16.msra.mxu0 %v323_v1  ;;  %296 = vmatpush3.bf16.msra.mxu1 %v325_v4  ;;  %v330_v10 = vld [vmem:[#allocation8 + $0x10] sm:$0xff]   ;;  %v331_v11 = vld [vmem:[#allocation8 + $0x8] sm:$0xff]   ;;  %v332_v12 = vld [vmem:[#allocation8] sm:$0xff]   ;;  %p398_p2 = scmp.lt.s32.totalorder %s253_s12, %s253_s12 }
  0x29   :  { %289 = vmatprep.subr.bf16.mxu0 %v424_v0  ;;  %297 = vmatprep.subr.bf16.mxu1 %v424_v0  ;;  %v262_v13 = vld [vmem:[%s477_s2] ss:$0 sm:$0xff]  ;;  %s393_s2 = scalar_lea.vmem %s253_s12, 128 }
  0x2a   :  { %v266_v22 = vld [vmem:[%s479_s4] ss:$0 sm:$0xff]  ;;  %p394_p1 = scmp.ne.s32.totalorder %s253_s12, %s393_s2  ;;  %p399_p3 = scmp.lt.s32.totalorder %s393_s2, %s393_s2 }
  0x2c   :  { %290 = vmatpush3.bf16.msra.mxu0 %v324_v2  ;;  %298 = vmatpush3.bf16.msra.mxu1 %v326_v6  ;;  %p400_p4 = por %p399_p3, %p398_p2 }
  0x2d   :  { %299 = vmatprep.subr.bf16.mxu1 %v424_v0 }
  0x2e   :  { %p401_p5 = pnand %p400_p4, %p394_p1 }
  0x2f   :  { %292 = vmatmul.mubr.msk.bf16.vlgmr.msra.gmra.mxu0 %vm86_vm1, %v62_v5 }
  0x30   :  { %300 = vmatpush3.bf16.msra.mxu1 %v327_v7 }
  0x31   :  { %301 = vmatprep.subr.bf16.mxu1 %v424_v0 }
  0x34   :  { %302 = vmatpush3.bf16.msra.mxu1 %v328_v8 }
  0x35   :  { %303 = vmatprep.subr.bf16.mxu1 %v424_v0 }
  0x38   :  { %304 = vmatpush3.bf16.msra.mxu1 %v329_v9 }
  0x39   :  { %305 = vmatprep.subr.bf16.mxu1 %v424_v0 }
  0x3c   :  { %306 = vmatpush3.bf16.msra.mxu1 %v330_v10 }
  0x3d   :  { %307 = vmatprep.subr.bf16.mxu1 %v424_v0 }
  0x40   :  { %308 = vmatpush3.bf16.msra.mxu1 %v331_v11 }
  0x41   :  { %309 = vmatprep.subr.bf16.mxu1 %v424_v0 }
  0x44   :  { %310 = vmatpush3.bf16.msra.mxu1 %v332_v12 }
  0xef   :  { %v124_v14 = vpop.f32.mrf.mxu0 }
  0xf0   :  { %v125_v15 = vadd.f32 %v262_v13, %v124_v14 }
  0xf1   :  { %v293_v16 = vpop.f32.mrf.mxu0 }
  0xf2   :  { %v130_v17 = vmax.f32 %v125_v15, 0.0 }
  0xf3   :  { %v127_v18 = vpop.f32.mrf.mxu0 }
  0xf4   :  { %v131_v19 = vpack.c.bf16 %v130_v17, %v130_v17 }
  0xf5   :  { %v294_v20 = vpop.f32.mrf.mxu0 }
  0xf6   :  { %132 = vst [vmem:[#allocation2] sm:$0xf] %v131_v19 }
  0xfd   :  { %v133_v21 = vld [vmem:[#allocation2] sm:$0xf] }
  0xfe   :  { %312 = vmatmul.mubr.bf16.vlgmr.msra.gmra.mxu1 %v133_v21 }
 0x1be   :  { %v239_v23 = vpop.f32.mrf.mxu1 }
 0x1bf   :  { %v240_v24 = vadd.f32 %v266_v22, %v239_v23 }
 0x1c0   :  { %v313_v25 = vpop.f32.mrf.mxu1 }
 0x1c1   :  { %245 = vst [vmem:[#allocation9] sm:$0xff] %v240_v24 }
 0x1c2   :  { %v242_v26 = vpop.f32.mrf.mxu1 }
 0x1c3   :  { %404 = shalt.err (!%p401_p5)
}
 0x1c4   :  { %255 = dma.vmem_to_hbm [thread:$0]  %s253_s12, 128, %s480_s5, [#allocation5]   ;;  %v314_v27 = vpop.f32.mrf.mxu1 }
 0x1c5   :  { %417 = dma.done.wait [#allocation5], 128  }
 0x1c6   :  { %418 = vsyncadd [#allocation5], 4294967168 }
 0x1c7   :  { %259 = vsyncpa [#allocation4], 1 }
 0x1c8   :  { %260 = vsyncpa [#allocation7], 1 }
 0x1c9   :  { %261 = vsyncpa [#allocation5], 1 }

</bundles_post_ra>
